<compile_context>
chip_gen: v5e
topology: v5e:2x2
jax: 0.10.0
libtpu: 0.0.40
codegen_flags: <defaults>
</compile_context>

<pallas_src>
import functools

import numpy as np
import jax
import jax.numpy as jnp
from jax.experimental import pallas as pl
from jax.experimental.pallas import tpu as pltpu

LANES = 128


def _round_up(n, m):
    return ((n + m - 1) // m) * m


def _dqn_kernel(x_ref, w1_ref, b1_ref, w2_ref, b2_ref,
                w3_ref, b3_ref, w4_ref, b4_ref, o_ref, *, ew_dtype):
    """Whole MLP hot path for one (tb, in) batch tile, entirely in VMEM.

    Matmuls run on the MXU in the stored weight dtype with f32 accumulation;
    bias-add / ReLU run in `ew_dtype` (f32 is safe everywhere; bf16 halves the
    VALU element count / vreg pressure on the bf16-capable VPUs of v6e/v7x).
    """
    wdt = w1_ref.dtype

    def layer(h, w_ref, b_ref, relu):
        acc = jnp.dot(h.astype(wdt), w_ref[...],
                      preferred_element_type=jnp.float32)
        acc = acc.astype(ew_dtype) + b_ref[...]
        if relu:
            acc = jnp.maximum(acc, 0.0)
        return acc

    h = layer(x_ref[...], w1_ref, b1_ref, relu=True)
    h = layer(h, w2_ref, b2_ref, relu=True)
    h = layer(h, w3_ref, b3_ref, relu=True)
    out = layer(h, w4_ref, b4_ref, relu=False)
    o_ref[...] = out.astype(o_ref.dtype)


def _choose_tile(B, batch_tile):
    # (8,128) rule: the batch tile (second-to-last dim of x/out blocks) must be
    # a multiple of 8 unless it equals the full (padded) extent.
    batch_tile = _round_up(max(int(batch_tile), 8), 8)
    # v5e scoped-VMEM headroom: bound the f32 intermediate footprint.
    batch_tile = min(batch_tile, 2048)
    n_steps = max(1, -(-B // batch_tile))
    # v7x megacore: "parallel" only shards across the 2 TensorCores if grid > 1.
    if B >= 16:
        n_steps = max(n_steps, 2)
    # Balanced tiles: avoid a nearly-empty tail step (Bp - B stays < 8*n_steps).
    tb = _round_up(-(-B // n_steps), 8)
    Bp = tb * n_steps
    return tb, Bp, n_steps


def dqn_forward(x, params, *,
                weights_dtype=jnp.bfloat16,
                elementwise_dtype=jnp.float32,
                out_dtype=None,
                batch_tile=1024):
    """x: (B, input_size). params: w_i (in,out) and b_i (1,out), float32.

    Defaults: bf16 weight storage + bf16 lane-dense output slab, f32 MXU
    accumulation and f32 elementwise. On v6e/v7x pass
    elementwise_dtype=jnp.bfloat16 for bf16 VPU elementwise; keep f32 on v5e.
    """
    B, in_size = x.shape
    out_size = params["w4"].shape[1]
    if out_dtype is None:
        out_dtype = jnp.float32 if weights_dtype == jnp.float32 else jnp.bfloat16
    ew = elementwise_dtype

    # ---- lane-pad the narrow trailing dims (64-wide h3, small output) to 128 ----
    h3_p = _round_up(params["w3"].shape[1], LANES)   # 64  -> 128
    out_p = _round_up(out_size, LANES)               # e.g. 8 -> 128

    w1 = params["w1"].astype(weights_dtype)
    b1 = params["b1"].astype(ew)
    w2 = params["w2"].astype(weights_dtype)
    b2 = params["b2"].astype(ew)
    w3 = jnp.pad(params["w3"],
                 ((0, 0), (0, h3_p - params["w3"].shape[1]))).astype(weights_dtype)
    b3 = jnp.pad(params["b3"],
                 ((0, 0), (0, h3_p - params["b3"].shape[1]))).astype(ew)
    w4 = jnp.pad(params["w4"],
                 ((0, h3_p - params["w4"].shape[0]),
                  (0, out_p - out_size))).astype(weights_dtype)
    b4 = jnp.pad(params["b4"], ((0, 0), (0, out_p - out_size))).astype(ew)
    weights = (w1, b1, w2, b2, w3, b3, w4, b4)

    # ---- batch grid: balanced tiles; weights stay VMEM-resident across steps ----
    tb, Bp, n_steps = _choose_tile(B, batch_tile)
    xp = x if Bp == B else jnp.pad(x, ((0, Bp - B), (0, 0)))
    grid = (n_steps,)

    def const_spec(a, single_buffer):
        # Constant block index: DMA'd once, resident across the whole grid.
        if single_buffer:
            try:
                # Second pipeline buffer is dead weight for a constant block.
                return pl.BlockSpec(a.shape, lambda i: (0, 0),
                                    pipeline_mode=pl.Buffered(1))
            except TypeError:
                pass
        return pl.BlockSpec(a.shape, lambda i: (0, 0))

    flops = 2 * Bp * (in_size * 256 + 256 * 128 + 128 * h3_p + h3_p * out_p)
    bytes_accessed = (xp.size * xp.dtype.itemsize
                      + sum(a.size * a.dtype.itemsize for a in weights)
                      + Bp * out_p * np.dtype(out_dtype).itemsize)

    kernel = functools.partial(_dqn_kernel, ew_dtype=ew)

    def build(single_buffer):
        return pl.pallas_call(
            kernel,
            out_shape=jax.ShapeDtypeStruct((Bp, out_p), out_dtype),
            grid=grid,
            in_specs=[pl.BlockSpec((tb, in_size), lambda i: (i, 0))]
                     + [const_spec(a, single_buffer) for a in weights],
            out_specs=pl.BlockSpec((tb, out_p), lambda i: (i, 0)),
            compiler_params=pltpu.CompilerParams(
                dimension_semantics=("parallel",),
                vmem_limit_bytes=32 * 1024 * 1024),
            cost_estimate=pl.CostEstimate(flops=flops, transcendentals=0,
                                          bytes_accessed=bytes_accessed),
        )

    try:
        out = build(True)(xp, *weights)
    except Exception:
        # Fallback if single-buffered (Buffered(1)) constant specs are rejected.
        out = build(False)(xp, *weights)

    return out[:B, :out_size].astype(x.dtype)


def init_params(key, input_size, output_size):
    """Deterministic init matching PyTorch Linear shapes (stored transposed)."""
    dims = [(input_size, 256), (256, 128), (128, 64), (64, output_size)]
    params = {}
    for i, (fan_in, fan_out) in enumerate(dims, start=1):
        key, kw, kb = jax.random.split(key, 3)
        bound = 1.0 / (fan_in ** 0.5)  # PyTorch default uniform(-1/sqrt(in), 1/sqrt(in))
        params[f"w{i}"] = jax.random.uniform(
            kw, (fan_in, fan_out), jnp.float32, minval=-bound, maxval=bound)
        params[f"b{i}"] = jax.random.uniform(
            kb, (1, fan_out), jnp.float32, minval=-bound, maxval=bound)
    return params


def dqn_reference(x, params):
    h = jnp.maximum(x @ params["w1"] + params["b1"], 0.0)
    h = jnp.maximum(h @ params["w2"] + params["b2"], 0.0)
    h = jnp.maximum(h @ params["w3"] + params["b3"], 0.0)
    return h @ params["w4"] + params["b4"]


if __name__ == "__main__":
    key = jax.random.PRNGKey(0)
    batch, input_size, output_size = 8, 32, 8

    kx, kp = jax.random.split(key)
    x = jax.random.normal(kx, (batch, input_size), jnp.float32)
    params = init_params(kp, input_size, output_size)
    ref = dqn_reference(x, params)

    # fp32 everything: exact match against the pure-JAX reference.
    out_f32 = dqn_forward(x, params, weights_dtype=jnp.float32)
    jax.block_until_ready(out_f32)
    assert out_f32.shape == (batch, output_size)
    assert jnp.allclose(out_f32, ref, atol=1e-4, rtol=1e-4)

    # Default path: bf16 weights + bf16 output, f32 accumulation & elementwise.
    out_bf16w = dqn_forward(x, params)
    jax.block_until_ready(out_bf16w)
    assert out_bf16w.shape == (batch, output_size)
    assert jnp.allclose(out_bf16w, ref, atol=5e-2, rtol=5e-2)

    # bf16 elementwise as well (recommended on v6e/v7x; still correct on v5e).
    out_bf16e = dqn_forward(x, params, elementwise_dtype=jnp.bfloat16)
    jax.block_until_ready(out_bf16e)
    assert jnp.allclose(out_bf16e, ref, atol=1e-1, rtol=1e-1)

    # Multi-step grid + balanced tail tile (exercises megacore/tiling path).
    xb = jax.random.normal(kx, (40, input_size), jnp.float32)
    out_big = dqn_forward(xb, params, weights_dtype=jnp.float32, batch_tile=16)
    jax.block_until_ready(out_big)
    assert jnp.allclose(out_big, dqn_reference(xb, params), atol=1e-4, rtol=1e-4)

    print("KERNEL_OK")
</pallas_src>

<mosaic_0001>
module attributes {stable_mosaic.version = 11 : i64} {
  func.func @_dqn_kernel(%arg0: i32, %arg1: memref<8x32xf32, #tpu.memory_space<vmem>>, %arg2: memref<32x256xf32, #tpu.memory_space<vmem>>, %arg3: memref<1x256xf32, #tpu.memory_space<vmem>>, %arg4: memref<256x128xf32, #tpu.memory_space<vmem>>, %arg5: memref<1x128xf32, #tpu.memory_space<vmem>>, %arg6: memref<128x128xf32, #tpu.memory_space<vmem>>, %arg7: memref<1x128xf32, #tpu.memory_space<vmem>>, %arg8: memref<128x128xf32, #tpu.memory_space<vmem>>, %arg9: memref<1x128xf32, #tpu.memory_space<vmem>>, %arg10: memref<8x128xf32, #tpu.memory_space<vmem>>) attributes {dimension_semantics = [#tpu.dimension_semantics<parallel>], iteration_bounds = array<i64: 1>, scalar_prefetch = 0 : i64, scratch_operands = 0 : i64, tpu.core_type = #tpu.core_type<tc>, window_params = [{transform_indices = @transform_0, window_bounds = array<i64: 8, 32>}, {pipeline_mode = #tpu.pipeline_mode<synchronous>, transform_indices = @transform_1, window_bounds = array<i64: 32, 256>}, {pipeline_mode = #tpu.pipeline_mode<synchronous>, transform_indices = @transform_2, window_bounds = array<i64: 1, 256>}, {pipeline_mode = #tpu.pipeline_mode<synchronous>, transform_indices = @transform_3, window_bounds = array<i64: 256, 128>}, {pipeline_mode = #tpu.pipeline_mode<synchronous>, transform_indices = @transform_4, window_bounds = array<i64: 1, 128>}, {pipeline_mode = #tpu.pipeline_mode<synchronous>, transform_indices = @transform_5, window_bounds = array<i64: 128, 128>}, {pipeline_mode = #tpu.pipeline_mode<synchronous>, transform_indices = @transform_6, window_bounds = array<i64: 1, 128>}, {pipeline_mode = #tpu.pipeline_mode<synchronous>, transform_indices = @transform_7, window_bounds = array<i64: 128, 128>}, {pipeline_mode = #tpu.pipeline_mode<synchronous>, transform_indices = @transform_8, window_bounds = array<i64: 1, 128>}, {transform_indices = @transform_9, window_bounds = array<i64: 8, 128>}]} {
    %c0 = arith.constant 0 : index
    %c0_0 = arith.constant 0 : index
    %0 = vector.load %arg1[%c0, %c0_0] : memref<8x32xf32, #tpu.memory_space<vmem>>, vector<8x32xf32>
    %c0_1 = arith.constant 0 : index
    %c0_2 = arith.constant 0 : index
    %1 = vector.load %arg2[%c0_1, %c0_2] : memref<32x256xf32, #tpu.memory_space<vmem>>, vector<32x256xf32>
    %cst = arith.constant dense<0.000000e+00> : vector<8x256xf32>
    %2 = tpu.matmul %0, %1, %cst {dimension_numbers = #tpu.dot_dimension_numbers<[1], [0], [0], [1], [0, 0, 1, 1], [], []>} : vector<8x32xf32>, vector<32x256xf32>, vector<8x256xf32> -> vector<8x256xf32>
    %c0_3 = arith.constant 0 : index
    %c0_4 = arith.constant 0 : index
    %3 = vector.load %arg3[%c0_3, %c0_4] : memref<1x256xf32, #tpu.memory_space<vmem>>, vector<1x256xf32>
    %4 = vector.broadcast %3 : vector<1x256xf32> to vector<8x256xf32>
    %5 = arith.addf %2, %4 : vector<8x256xf32>
    %cst_5 = arith.constant 0.000000e+00 : f32
    %6 = vector.broadcast %cst_5 : f32 to vector<8x256xf32>
    %7 = arith.maximumf %5, %6 : vector<8x256xf32>
    %c0_6 = arith.constant 0 : index
    %c0_7 = arith.constant 0 : index
    %8 = vector.load %arg4[%c0_6, %c0_7] : memref<256x128xf32, #tpu.memory_space<vmem>>, vector<256x128xf32>
    %cst_8 = arith.constant dense<0.000000e+00> : vector<8x128xf32>
    %9 = tpu.matmul %7, %8, %cst_8 {dimension_numbers = #tpu.dot_dimension_numbers<[1], [0], [0], [1], [0, 0, 1, 1], [], []>} : vector<8x256xf32>, vector<256x128xf32>, vector<8x128xf32> -> vector<8x128xf32>
    %c0_9 = arith.constant 0 : index
    %c0_10 = arith.constant 0 : index
    %10 = vector.load %arg5[%c0_9, %c0_10] : memref<1x128xf32, #tpu.memory_space<vmem>>, vector<1x128xf32>
    %11 = vector.broadcast %10 : vector<1x128xf32> to vector<8x128xf32>
    %12 = arith.addf %9, %11 : vector<8x128xf32>
    %cst_11 = arith.constant 0.000000e+00 : f32
    %13 = vector.broadcast %cst_11 : f32 to vector<8x128xf32>
    %14 = arith.maximumf %12, %13 : vector<8x128xf32>
    %c0_12 = arith.constant 0 : index
    %c0_13 = arith.constant 0 : index
    %15 = vector.load %arg6[%c0_12, %c0_13] : memref<128x128xf32, #tpu.memory_space<vmem>>, vector<128x128xf32>
    %cst_14 = arith.constant dense<0.000000e+00> : vector<8x128xf32>
    %16 = tpu.matmul %14, %15, %cst_14 {dimension_numbers = #tpu.dot_dimension_numbers<[1], [0], [0], [1], [0, 0, 1, 1], [], []>} : vector<8x128xf32>, vector<128x128xf32>, vector<8x128xf32> -> vector<8x128xf32>
    %c0_15 = arith.constant 0 : index
    %c0_16 = arith.constant 0 : index
    %17 = vector.load %arg7[%c0_15, %c0_16] : memref<1x128xf32, #tpu.memory_space<vmem>>, vector<1x128xf32>
    %18 = vector.broadcast %17 : vector<1x128xf32> to vector<8x128xf32>
    %19 = arith.addf %16, %18 : vector<8x128xf32>
    %cst_17 = arith.constant 0.000000e+00 : f32
    %20 = vector.broadcast %cst_17 : f32 to vector<8x128xf32>
    %21 = arith.maximumf %19, %20 : vector<8x128xf32>
    %c0_18 = arith.constant 0 : index
    %c0_19 = arith.constant 0 : index
    %22 = vector.load %arg8[%c0_18, %c0_19] : memref<128x128xf32, #tpu.memory_space<vmem>>, vector<128x128xf32>
    %cst_20 = arith.constant dense<0.000000e+00> : vector<8x128xf32>
    %23 = tpu.matmul %21, %22, %cst_20 {dimension_numbers = #tpu.dot_dimension_numbers<[1], [0], [0], [1], [0, 0, 1, 1], [], []>} : vector<8x128xf32>, vector<128x128xf32>, vector<8x128xf32> -> vector<8x128xf32>
    %c0_21 = arith.constant 0 : index
    %c0_22 = arith.constant 0 : index
    %24 = vector.load %arg9[%c0_21, %c0_22] : memref<1x128xf32, #tpu.memory_space<vmem>>, vector<1x128xf32>
    %25 = vector.broadcast %24 : vector<1x128xf32> to vector<8x128xf32>
    %26 = arith.addf %23, %25 : vector<8x128xf32>
    %c0_23 = arith.constant 0 : index
    %c0_24 = arith.constant 0 : index
    %27 = vector.load %arg10[%c0_23, %c0_24] : memref<8x128xf32, #tpu.memory_space<vmem>>, vector<8x128xf32>
    tpu.vector_store %arg10[%c0_23, %c0_24], %26 {strides = array<i32>} : memref<8x128xf32, #tpu.memory_space<vmem>>, vector<8x128xf32>,
    return
  }
  func.func @transform_0(%arg0: i32) -> (i32, i32) {
    %c0_i32 = arith.constant 0 : i32
    %c0_i32_0 = arith.constant 0 : i32
    return %arg0, %c0_i32 : i32, i32
  }
  func.func @transform_1(%arg0: i32) -> (i32, i32) {
    %c0_i32 = arith.constant 0 : i32
    %c0_i32_0 = arith.constant 0 : i32
    %c0_i32_1 = arith.constant 0 : i32
    return %c0_i32, %c0_i32_0 : i32, i32
  }
  func.func @transform_2(%arg0: i32) -> (i32, i32) {
    %c0_i32 = arith.constant 0 : i32
    %c0_i32_0 = arith.constant 0 : i32
    %c0_i32_1 = arith.constant 0 : i32
    return %c0_i32, %c0_i32_0 : i32, i32
  }
  func.func @transform_3(%arg0: i32) -> (i32, i32) {
    %c0_i32 = arith.constant 0 : i32
    %c0_i32_0 = arith.constant 0 : i32
    %c0_i32_1 = arith.constant 0 : i32
    return %c0_i32, %c0_i32_0 : i32, i32
  }
  func.func @transform_4(%arg0: i32) -> (i32, i32) {
    %c0_i32 = arith.constant 0 : i32
    %c0_i32_0 = arith.constant 0 : i32
    %c0_i32_1 = arith.constant 0 : i32
    return %c0_i32, %c0_i32_0 : i32, i32
  }
  func.func @transform_5(%arg0: i32) -> (i32, i32) {
    %c0_i32 = arith.constant 0 : i32
    %c0_i32_0 = arith.constant 0 : i32
    %c0_i32_1 = arith.constant 0 : i32
    return %c0_i32, %c0_i32_0 : i32, i32
  }
  func.func @transform_6(%arg0: i32) -> (i32, i32) {
    %c0_i32 = arith.constant 0 : i32
    %c0_i32_0 = arith.constant 0 : i32
    %c0_i32_1 = arith.constant 0 : i32
    return %c0_i32, %c0_i32_0 : i32, i32
  }
  func.func @transform_7(%arg0: i32) -> (i32, i32) {
    %c0_i32 = arith.constant 0 : i32
    %c0_i32_0 = arith.constant 0 : i32
    %c0_i32_1 = arith.constant 0 : i32
    return %c0_i32, %c0_i32_0 : i32, i32
  }
  func.func @transform_8(%arg0: i32) -> (i32, i32) {
    %c0_i32 = arith.constant 0 : i32
    %c0_i32_0 = arith.constant 0 : i32
    %c0_i32_1 = arith.constant 0 : i32
    return %c0_i32, %c0_i32_0 : i32, i32
  }
  func.func @transform_9(%arg0: i32) -> (i32, i32) {
    %c0_i32 = arith.constant 0 : i32
    %c0_i32_0 = arith.constant 0 : i32
    return %arg0, %c0_i32 : i32, i32
  }
}

module attributes {stable_mosaic.version = 11 : i64} {
  func.func @_dqn_kernel(%arg0: i32, %arg1: memref<8x32xf32, #tpu.memory_space<vmem>>, %arg2: memref<32x256xf32, #tpu.memory_space<vmem>>, %arg3: memref<1x256xf32, #tpu.memory_space<vmem>>, %arg4: memref<256x128xf32, #tpu.memory_space<vmem>>, %arg5: memref<1x128xf32, #tpu.memory_space<vmem>>, %arg6: memref<128x128xf32, #tpu.memory_space<vmem>>, %arg7: memref<1x128xf32, #tpu.memory_space<vmem>>, %arg8: memref<128x128xf32, #tpu.memory_space<vmem>>, %arg9: memref<1x128xf32, #tpu.memory_space<vmem>>, %arg10: memref<8x128xf32, #tpu.memory_space<vmem>>) attributes {dimension_semantics = [#tpu.dimension_semantics<parallel>], iteration_bounds = array<i64: 1>, scalar_prefetch = 0 : i64, scratch_operands = 0 : i64, tpu.core_type = #tpu.core_type<tc>, window_params = [{transform_indices = @transform_0, window_bounds = array<i64: 8, 32>}, {pipeline_mode = #tpu.pipeline_mode<synchronous>, transform_indices = @transform_1, window_bounds = array<i64: 32, 256>}, {pipeline_mode = #tpu.pipeline_mode<synchronous>, transform_indices = @transform_2, window_bounds = array<i64: 1, 256>}, {pipeline_mode = #tpu.pipeline_mode<synchronous>, transform_indices = @transform_3, window_bounds = array<i64: 256, 128>}, {pipeline_mode = #tpu.pipeline_mode<synchronous>, transform_indices = @transform_4, window_bounds = array<i64: 1, 128>}, {pipeline_mode = #tpu.pipeline_mode<synchronous>, transform_indices = @transform_5, window_bounds = array<i64: 128, 128>}, {pipeline_mode = #tpu.pipeline_mode<synchronous>, transform_indices = @transform_6, window_bounds = array<i64: 1, 128>}, {pipeline_mode = #tpu.pipeline_mode<synchronous>, transform_indices = @transform_7, window_bounds = array<i64: 128, 128>}, {pipeline_mode = #tpu.pipeline_mode<synchronous>, transform_indices = @transform_8, window_bounds = array<i64: 1, 128>}, {transform_indices = @transform_9, window_bounds = array<i64: 8, 128>}]} {
    %c0 = arith.constant 0 : index
    %c0_0 = arith.constant 0 : index
    %0 = vector.load %arg1[%c0, %c0_0] : memref<8x32xf32, #tpu.memory_space<vmem>>, vector<8x32xf32>
    %c0_1 = arith.constant 0 : index
    %c0_2 = arith.constant 0 : index
    %1 = vector.load %arg2[%c0_1, %c0_2] : memref<32x256xf32, #tpu.memory_space<vmem>>, vector<32x256xf32>
    %cst = arith.constant dense<0.000000e+00> : vector<8x256xf32>
    %2 = tpu.matmul %0, %1, %cst {dimension_numbers = #tpu.dot_dimension_numbers<[1], [0], [0], [1], [0, 0, 1, 1], [], []>} : vector<8x32xf32>, vector<32x256xf32>, vector<8x256xf32> -> vector<8x256xf32>
    %c0_3 = arith.constant 0 : index
    %c0_4 = arith.constant 0 : index
    %3 = vector.load %arg3[%c0_3, %c0_4] : memref<1x256xf32, #tpu.memory_space<vmem>>, vector<1x256xf32>
    %4 = vector.broadcast %3 : vector<1x256xf32> to vector<8x256xf32>
    %5 = arith.addf %2, %4 : vector<8x256xf32>
    %cst_5 = arith.constant 0.000000e+00 : f32
    %6 = vector.broadcast %cst_5 : f32 to vector<8x256xf32>
    %7 = arith.maximumf %5, %6 : vector<8x256xf32>
    %c0_6 = arith.constant 0 : index
    %c0_7 = arith.constant 0 : index
    %8 = vector.load %arg4[%c0_6, %c0_7] : memref<256x128xf32, #tpu.memory_space<vmem>>, vector<256x128xf32>
    %cst_8 = arith.constant dense<0.000000e+00> : vector<8x128xf32>
    %9 = tpu.matmul %7, %8, %cst_8 {dimension_numbers = #tpu.dot_dimension_numbers<[1], [0], [0], [1], [0, 0, 1, 1], [], []>} : vector<8x256xf32>, vector<256x128xf32>, vector<8x128xf32> -> vector<8x128xf32>
    %c0_9 = arith.constant 0 : index
    %c0_10 = arith.constant 0 : index
    %10 = vector.load %arg5[%c0_9, %c0_10] : memref<1x128xf32, #tpu.memory_space<vmem>>, vector<1x128xf32>
    %11 = vector.broadcast %10 : vector<1x128xf32> to vector<8x128xf32>
    %12 = arith.addf %9, %11 : vector<8x128xf32>
    %cst_11 = arith.constant 0.000000e+00 : f32
    %13 = vector.broadcast %cst_11 : f32 to vector<8x128xf32>
    %14 = arith.maximumf %12, %13 : vector<8x128xf32>
    %c0_12 = arith.constant 0 : index
    %c0_13 = arith.constant 0 : index
    %15 = vector.load %arg6[%c0_12, %c0_13] : memref<128x128xf32, #tpu.memory_space<vmem>>, vector<128x128xf32>
    %cst_14 = arith.constant dense<0.000000e+00> : vector<8x128xf32>
    %16 = tpu.matmul %14, %15, %cst_14 {dimension_numbers = #tpu.dot_dimension_numbers<[1], [0], [0], [1], [0, 0, 1, 1], [], []>} : vector<8x128xf32>, vector<128x128xf32>, vector<8x128xf32> -> vector<8x128xf32>
    %c0_15 = arith.constant 0 : index
    %c0_16 = arith.constant 0 : index
    %17 = vector.load %arg7[%c0_15, %c0_16] : memref<1x128xf32, #tpu.memory_space<vmem>>, vector<1x128xf32>
    %18 = vector.broadcast %17 : vector<1x128xf32> to vector<8x128xf32>
    %19 = arith.addf %16, %18 : vector<8x128xf32>
    %cst_17 = arith.constant 0.000000e+00 : f32
    %20 = vector.broadcast %cst_17 : f32 to vector<8x128xf32>
    %21 = arith.maximumf %19, %20 : vector<8x128xf32>
    %c0_18 = arith.constant 0 : index
    %c0_19 = arith.constant 0 : index
    %22 = vector.load %arg8[%c0_18, %c0_19] : memref<128x128xf32, #tpu.memory_space<vmem>>, vector<128x128xf32>
    %cst_20 = arith.constant dense<0.000000e+00> : vector<8x128xf32>
    %23 = tpu.matmul %21, %22, %cst_20 {dimension_numbers = #tpu.dot_dimension_numbers<[1], [0], [0], [1], [0, 0, 1, 1], [], []>} : vector<8x128xf32>, vector<128x128xf32>, vector<8x128xf32> -> vector<8x128xf32>
    %c0_21 = arith.constant 0 : index
    %c0_22 = arith.constant 0 : index
    %24 = vector.load %arg9[%c0_21, %c0_22] : memref<1x128xf32, #tpu.memory_space<vmem>>, vector<1x128xf32>
    %25 = vector.broadcast %24 : vector<1x128xf32> to vector<8x128xf32>
    %26 = arith.addf %23, %25 : vector<8x128xf32>
    %c0_23 = arith.constant 0 : index
    %c0_24 = arith.constant 0 : index
    %27 = vector.load %arg10[%c0_23, %c0_24] : memref<8x128xf32, #tpu.memory_space<vmem>>, vector<8x128xf32>
    tpu.vector_store %arg10[%c0_23, %c0_24], %26 {strides = array<i32>} : memref<8x128xf32, #tpu.memory_space<vmem>>, vector<8x128xf32>,
    return
  }
  func.func @transform_0(%arg0: i32) -> (i32, i32) {
    %c0_i32 = arith.constant 0 : i32
    %c0_i32_0 = arith.constant 0 : i32
    return %arg0, %c0_i32 : i32, i32
  }
  func.func @transform_1(%arg0: i32) -> (i32, i32) {
    %c0_i32 = arith.constant 0 : i32
    %c0_i32_0 = arith.constant 0 : i32
    %c0_i32_1 = arith.constant 0 : i32
    return %c0_i32, %c0_i32_0 : i32, i32
  }
  func.func @transform_2(%arg0: i32) -> (i32, i32) {
    %c0_i32 = arith.constant 0 : i32
    %c0_i32_0 = arith.constant 0 : i32
    %c0_i32_1 = arith.constant 0 : i32
    return %c0_i32, %c0_i32_0 : i32, i32
  }
  func.func @transform_3(%arg0: i32) -> (i32, i32) {
    %c0_i32 = arith.constant 0 : i32
    %c0_i32_0 = arith.constant 0 : i32
    %c0_i32_1 = arith.constant 0 : i32
    return %c0_i32, %c0_i32_0 : i32, i32
  }
  func.func @transform_4(%arg0: i32) -> (i32, i32) {
    %c0_i32 = arith.constant 0 : i32
    %c0_i32_0 = arith.constant 0 : i32
    %c0_i32_1 = arith.constant 0 : i32
    return %c0_i32, %c0_i32_0 : i32, i32
  }
  func.func @transform_5(%arg0: i32) -> (i32, i32) {
    %c0_i32 = arith.constant 0 : i32
    %c0_i32_0 = arith.constant 0 : i32
    %c0_i32_1 = arith.constant 0 : i32
    return %c0_i32, %c0_i32_0 : i32, i32
  }
  func.func @transform_6(%arg0: i32) -> (i32, i32) {
    %c0_i32 = arith.constant 0 : i32
    %c0_i32_0 = arith.constant 0 : i32
    %c0_i32_1 = arith.constant 0 : i32
    return %c0_i32, %c0_i32_0 : i32, i32
  }
  func.func @transform_7(%arg0: i32) -> (i32, i32) {
    %c0_i32 = arith.constant 0 : i32
    %c0_i32_0 = arith.constant 0 : i32
    %c0_i32_1 = arith.constant 0 : i32
    return %c0_i32, %c0_i32_0 : i32, i32
  }
  func.func @transform_8(%arg0: i32) -> (i32, i32) {
    %c0_i32 = arith.constant 0 : i32
    %c0_i32_0 = arith.constant 0 : i32
    %c0_i32_1 = arith.constant 0 : i32
    return %c0_i32, %c0_i32_0 : i32, i32
  }
  func.func @transform_9(%arg0: i32) -> (i32, i32) {
    %c0_i32 = arith.constant 0 : i32
    %c0_i32_0 = arith.constant 0 : i32
    return %arg0, %c0_i32 : i32, i32
  }
}

</mosaic_0001>

<bundles_post_ra>
// kernel: tpu_custom_call.1
= control target key start
LH: loop header
LB: loop body
LE: loop exit
PB: predicated region body
PF: predicated region fallthrough
CT: control target
= control target key end

     0   :  { %14 = vsyncpa [#allocation3], 0  ;;  %s648_s0 = inlined_call_operand.hbm [shape: f32[8,32], index: 0, kind: input, shape index: {}]   ;;  %s649_s1 = inlined_call_operand.hbm [shape: f32[32,256], index: 1, kind: input, shape index: {}]   ;;  %s650_s2 = inlined_call_operand.hbm [shape: f32[1,256], index: 2, kind: input, shape index: {}]   ;;  %s651_s3 = inlined_call_operand.hbm [shape: f32[256,128], index: 3, kind: input, shape index: {}]   ;;  %s652_s4 = inlined_call_operand.vmem [shape: f32[1,128], index: 4, kind: input, shape index: {}]   ;;  %s653_s5 = inlined_call_operand.hbm [shape: f32[128,128], index: 5, kind: input, shape index: {}]   ;;  %s654_s6 = inlined_call_operand.vmem [shape: f32[1,128], index: 6, kind: input, shape index: {}]   ;;  %s655_s7 = inlined_call_operand.hbm [shape: f32[128,128], index: 7, kind: input, shape index: {}]   ;;  %s656_s8 = inlined_call_operand.vmem [shape: f32[1,128], index: 8, kind: input, shape index: {}]   ;;  %s657_s9 = inlined_call_operand.hbm [shape: f32[8,128], index: 9, kind: output, shape index: {}]  }
   0x1   :  { %15 = vsyncpa [#allocation6], 0 }
   0x2   :  { %16 = vsyncpa [#allocation9], 0 }
   0x3   :  { %17 = vsyncpa [#allocation12], 0  ;;  %s34_s11 = sshll.u32 %s649_s1, 4  ;;  %s35_s11 = int_to_ptr.hbm [resolvable:$true] %s34_s11 }
   0x4   :  { %18 = vsyncpa [#allocation4], 0  ;;  %s557_s12 = smov [#allocation5]   ;;  %s58_s16 = sshll.u32 %s651_s3, 4  ;;  %s59_s16 = int_to_ptr.hbm [resolvable:$true] %s58_s16 }
   0x5   :  { %s36_s13 = sshll.u32 %s557_s12, 4  ;;  %s558_s17 = smov 256   ;;  %s37_s13 = int_to_ptr.vmem [resolvable:$true] %s36_s13 }
   0x6   :  { %s559_s18 = smov 16   ;;  %s560_s19 = smov [#allocation8]  }
   0x7   :  { %42 = dma.hbm_to_vmem [thread:$0]  %s35_s11, 1024, %s37_s13, [#allocation6], %s558_s17, %s558_s17, %s559_s18  }
   0x8   :  { %s60_s20 = sshll.u32 %s560_s19, 4  ;;  %s561_s21 = smov 128   ;;  %s61_s20 = int_to_ptr.vmem [resolvable:$true] %s60_s20 }
   0x9   :  { %s562_s22 = smov 8   ;;  %s24_s24 = sshll.u32 %s648_s0, 4  ;;  %s25_s24 = int_to_ptr.hbm [resolvable:$true] %s24_s24 }
   0xa   :  { %66 = dma.hbm_to_vmem [thread:$0]  %s59_s16, 4096, %s61_s20, [#allocation9], %s561_s21, %s561_s21, %s562_s22  }
   0xb   :  { %s563_s25 = smov [#allocation2]   ;;  %s48_s28 = sshll.u32 %s650_s2, 4  ;;  %s49_s28 = int_to_ptr.hbm [resolvable:$true] %s48_s28 }
   0xc   :  { %s26_s26 = sshll.u32 %s563_s25, 4  ;;  %s564_s29 = smov [#allocation7]   ;;  %s27_s26 = int_to_ptr.vmem [resolvable:$true] %s26_s26 }
   0xd   :  { %29 = dma.hbm_to_vmem [thread:$0]  %s25_s24, 128, %s27_s26, [#allocation3]  }
   0xe   :  { %s50_s30 = sshll.u32 %s564_s29, 4  ;;  %s73_s12 = sshll.u32 %s653_s5, 4  ;;  %s51_s30 = int_to_ptr.vmem [resolvable:$true] %s50_s30  ;;  %s74_s12 = int_to_ptr.hbm [resolvable:$true] %s73_s12 }
   0xf   :  { %53 = dma.hbm_to_vmem [thread:$0]  %s49_s28, 32, %s51_s30, [#allocation6]  }
  0x10   :  { %s88_s14 = sshll.u32 %s655_s7, 4  ;;  %s565_s15 = smov [#allocation10]   ;;  %s89_s14 = int_to_ptr.hbm [resolvable:$true] %s88_s14 }
  0x11   :  { %s75_s16 = sshll.u32 %s565_s15, 4  ;;  %s566_s2 = smov [#allocation11]   ;;  %s76_s16 = int_to_ptr.vmem [resolvable:$true] %s75_s16 }
  0x12   :  { %81 = dma.hbm_to_vmem [thread:$0]  %s74_s12, 2048, %s76_s16, [#allocation9], %s561_s21, %s561_s21, %s562_s22  }
  0x13   :  { %s90_s17 = sshll.u32 %s566_s2, 4  ;;  %s91_s17 = int_to_ptr.vmem [resolvable:$true] %s90_s17 }
  0x14   :  { %96 = dma.hbm_to_vmem [thread:$0]  %s89_s14, 2048, %s91_s17, [#allocation12], %s561_s21, %s561_s21, %s562_s22  }
  0x15   :  { %547 = dma.done.wait [#allocation3], 128  }
  0x16   :  { %548 = vsyncadd [#allocation3], 4294967168 }
  0x17   :  { %549 = dma.done.wait [#allocation6], 1056  }
  0x18   :  { %550 = vsyncadd [#allocation6], 4294966240 }
  0x19   :  { %551 = dma.done.wait [#allocation9], 6144  }
  0x1a   :  { %552 = vsyncadd [#allocation9], 4294961152 }
  0x1b   :  { %553 = dma.done.wait [#allocation12], 2048  }
  0x1c   :  { %554 = vsyncadd [#allocation12], 4294965248  ;;  %v130_v0 = vld [vmem:[#allocation5 + $0x30] sm:$0xff]  ;;  %v128_v1 = vld [vmem:[#allocation5 + $0x20] sm:$0xff]  ;;  %vm138_vm0 = vcmask 261120   ;;  %s567_s21 = smov [#allocation13]  }
  0x1d   :  { %v131_v2 = vld [vmem:[#allocation5 + $0x38] sm:$0xff]  ;;  %154 = vmatpush.msra.mxu0 %v130_v0  ;;  %v129_v3 = vld [vmem:[#allocation5 + $0x28] sm:$0xff]  ;;  %v126_v4 = vld [vmem:[#allocation5 + $0x10] sm:$0xff]  ;;  %s348_s22 = sshll.u32 %s567_s21, 4  ;;  %s350_s24 = sshll.u32 %s657_s9, 4  ;;  %s349_s22 = int_to_ptr.vmem [resolvable:$true] %s348_s22  ;;  %s351_s24 = int_to_ptr.hbm [resolvable:$true] %s350_s24 }
  0x1e   :  { %174 = vmatpush.msra.mxu1 %v131_v2  ;;  %v127_v5 = vld [vmem:[#allocation5 + $0x18] sm:$0xff]  ;;  %v124_v9 = vld [vmem:[#allocation5] sm:$0xff]  ;;  %v125_v10 = vld [vmem:[#allocation5 + $0x8] sm:$0xff] }
  0x1f   :  { %155 = vmatpush.msra.mxu0 %v128_v1  ;;  %v199_v6 = vld [vmem:[#allocation8 + $0x78] sm:$0xff]  ;;  %v198_v7 = vld [vmem:[#allocation8 + $0x70] sm:$0xff]  ;;  %v197_v13 = vld [vmem:[#allocation8 + $0x68] sm:$0xff] }
  0x20   :  { %175 = vmatpush.msra.mxu1 %v129_v3  ;;  %v215_v8 = vld [vmem:[#allocation8 + $0xf8] sm:$0xff]  ;;  %220 = vmatpush.msra.mxu2 %v199_v6  ;;  %v214_v11 = vld [vmem:[#allocation8 + $0xf0] sm:$0xff]  ;;  %v213_v14 = vld [vmem:[#allocation8 + $0xe8] sm:$0xff] }
  0x21   :  { %240 = vmatpush.msra.mxu3 %v215_v8  ;;  %156 = vmatpush.msra.mxu0 %v126_v4  ;;  %v123_v12 = vld [vmem:[#allocation2] sm:$0xff]  ;;  %v196_v15 = vld [vmem:[#allocation8 + $0x60] sm:$0xff]  ;;  %v193_v21 = vld [vmem:[#allocation8 + $0x48] sm:$0xff] }
  0x22   :  { %176 = vmatpush.msra.mxu1 %v127_v5  ;;  %221 = vmatpush.msra.mxu2 %v198_v7  ;;  %v212_v16 = vld [vmem:[#allocation8 + $0xe0] sm:$0xff]  ;;  %v195_v17 = vld [vmem:[#allocation8 + $0x58] sm:$0xff]  ;;  %v194_v19 = vld [vmem:[#allocation8 + $0x50] sm:$0xff] }
  0x23   :  { %241 = vmatpush.msra.mxu3 %v214_v11  ;;  %157 = vmatpush.msra.mxu0 %v124_v9  ;;  %v211_v18 = vld [vmem:[#allocation8 + $0xd8] sm:$0xff]  ;;  %v210_v20 = vld [vmem:[#allocation8 + $0xd0] sm:$0xff]  ;;  %v209_v22 = vld [vmem:[#allocation8 + $0xc8] sm:$0xff] }
  0x24   :  { %177 = vmatpush.msra.mxu1 %v125_v10  ;;  %363 = vmatmul.msk.f32.vlgmr.msra.gmra.mxu0 %vm138_vm0, %v123_v12  ;;  %v192_v23 = vld [vmem:[#allocation8 + $0x40] sm:$0xff]  ;;  %v191_v25 = vld [vmem:[#allocation8 + $0x38] sm:$0xff]  ;;  %v190_v27 = vld [vmem:[#allocation8 + $0x30] sm:$0xff] }
  0x25   :  { %364 = vmatmul.msk.f32.vlgmr.msra.gmra.mxu1 %vm138_vm0, %v123_v12  ;;  %222 = vmatpush.msra.mxu2 %v197_v13  ;;  %v208_v24 = vld [vmem:[#allocation8 + $0xc0] sm:$0xff]  ;;  %v207_v26 = vld [vmem:[#allocation8 + $0xb8] sm:$0xff]  ;;  %v206_v28 = vld [vmem:[#allocation8 + $0xb0] sm:$0xff] }
  0x26   :  { %242 = vmatpush.msra.mxu3 %v213_v14  ;;  %v189_v29 = vld [vmem:[#allocation8 + $0x28] sm:$0xff]  ;;  %v188_v31 = vld [vmem:[#allocation8 + $0x20] sm:$0xff]  ;;  %v187_v33 = vld [vmem:[#allocation8 + $0x18] sm:$0xff] }
  0x27   :  { %223 = vmatpush.msra.mxu2 %v196_v15  ;;  %v205_v30 = vld [vmem:[#allocation8 + $0xa8] sm:$0xff]  ;;  %v204_v32 = vld [vmem:[#allocation8 + $0xa0] sm:$0xff]  ;;  %v186_v34 = vld [vmem:[#allocation8 + $0x10] sm:$0xff] }
  0x28   :  { %243 = vmatpush.msra.mxu3 %v212_v16  ;;  %v203_v35 = vld [vmem:[#allocation8 + $0x98] sm:$0xff]  ;;  %v185_v36 = vld [vmem:[#allocation8 + $0x8] sm:$0xff]  ;;  %v202_v37 = vld [vmem:[#allocation8 + $0x90] sm:$0xff] }
  0x29   :  { %224 = vmatpush.msra.mxu2 %v195_v17  ;;  %v184_v38 = vld [vmem:[#allocation8] sm:$0xff]  ;;  %v201_v39 = vld [vmem:[#allocation8 + $0x88] sm:$0xff]  ;;  %v276_v41 = vld [vmem:[#allocation10 + $0x78] sm:$0xff] }
  0x2a   :  { %244 = vmatpush.msra.mxu3 %v211_v18  ;;  %v200_v40 = vld [vmem:[#allocation8 + $0x80] sm:$0xff]  ;;  %v275_v42 = vld [vmem:[#allocation10 + $0x70] sm:$0xff]  ;;  %281 = vmatpush.msrb.mxu0 %v276_v41  ;;  %v274_v43 = vld [vmem:[#allocation10 + $0x68] sm:$0xff] }
  0x2b   :  { %225 = vmatpush.msra.mxu2 %v194_v19  ;;  %v273_v44 = vld [vmem:[#allocation10 + $0x60] sm:$0xff]  ;;  %v272_v45 = vld [vmem:[#allocation10 + $0x58] sm:$0xff]  ;;  %v271_v46 = vld [vmem:[#allocation10 + $0x50] sm:$0xff] }
  0x2c   :  { %245 = vmatpush.msra.mxu3 %v210_v20  ;;  %282 = vmatpush.msrb.mxu0 %v275_v42  ;;  %v270_v47 = vld [vmem:[#allocation10 + $0x48] sm:$0xff]  ;;  %v269_v48 = vld [vmem:[#allocation10 + $0x40] sm:$0xff]  ;;  %v268_v49 = vld [vmem:[#allocation10 + $0x38] sm:$0xff] }
  0x2d   :  { %226 = vmatpush.msra.mxu2 %v193_v21  ;;  %v267_v50 = vld [vmem:[#allocation10 + $0x30] sm:$0xff]  ;;  %v266_v51 = vld [vmem:[#allocation10 + $0x28] sm:$0xff]  ;;  %v265_v52 = vld [vmem:[#allocation10 + $0x20] sm:$0xff] }
  0x2e   :  { %246 = vmatpush.msra.mxu3 %v209_v22  ;;  %283 = vmatpush.msrb.mxu0 %v274_v43  ;;  %v132_v53 = vld [vmem:[#allocation7] sm:$0x3]  ;;  %v263_v63 = vld [vmem:[#allocation10 + $0x10] sm:$0xff]  ;;  %v262_v0 = vld [vmem:[#allocation10 + $0x8] sm:$0xff] }
  0x2f   :  { %227 = vmatpush.msra.mxu2 %v192_v23  ;;  %v134_v54 = vperm.slane %v132_v53, 0  ;;  %v135_v55 = vperm.slane %v132_v53, 1  ;;  %v264_v62 = vld [vmem:[#allocation10 + $0x18] sm:$0xff]  ;;  %v261_v1 = vld [vmem:[#allocation10] sm:$0xff]  ;;  %v316_v3 = vld [vmem:[#allocation11 + $0x70] sm:$0xff] }
  0x30   :  { %247 = vmatpush.msra.mxu3 %v208_v24  ;;  %284 = vmatpush.msrb.mxu0 %v273_v44  ;;  %v317_v2 = vld [vmem:[#allocation11 + $0x78] sm:$0xff]  ;;  %v315_v4 = vld [vmem:[#allocation11 + $0x68] sm:$0xff]  ;;  %v314_v5 = vld [vmem:[#allocation11 + $0x60] sm:$0xff] }
  0x31   :  { %228 = vmatpush.msra.mxu2 %v191_v25  ;;  %322 = vmatpush.msrb.mxu1 %v317_v2  ;;  %v313_v6 = vld [vmem:[#allocation11 + $0x58] sm:$0xff]  ;;  %v312_v7 = vld [vmem:[#allocation11 + $0x50] sm:$0xff]  ;;  %v311_v8 = vld [vmem:[#allocation11 + $0x48] sm:$0xff] }
  0x32   :  { %248 = vmatpush.msra.mxu3 %v207_v26  ;;  %285 = vmatpush.msrb.mxu0 %v272_v45  ;;  %v310_v9 = vld [vmem:[#allocation11 + $0x40] sm:$0xff]  ;;  %v309_v10 = vld [vmem:[#allocation11 + $0x38] sm:$0xff]  ;;  %v308_v11 = vld [vmem:[#allocation11 + $0x30] sm:$0xff] }
  0x33   :  { %229 = vmatpush.msra.mxu2 %v190_v27  ;;  %323 = vmatpush.msrb.mxu1 %v316_v3  ;;  %v307_v12 = vld [vmem:[#allocation11 + $0x28] sm:$0xff]  ;;  %v306_v13 = vld [vmem:[#allocation11 + $0x20] sm:$0xff]  ;;  %v376_v14 = vld [vmem:[%s652_s4] ss:$0 sm:$0xff] }
  0x34   :  { %249 = vmatpush.msra.mxu3 %v206_v28  ;;  %286 = vmatpush.msrb.mxu0 %v271_v46  ;;  %v305_v15 = vld [vmem:[#allocation11 + $0x18] sm:$0xff]  ;;  %v304_v21 = vld [vmem:[#allocation11 + $0x10] sm:$0xff]  ;;  %v303_v22 = vld [vmem:[#allocation11 + $0x8] sm:$0xff] }
  0x35   :  { %230 = vmatpush.msra.mxu2 %v189_v29  ;;  %324 = vmatpush.msrb.mxu1 %v315_v4  ;;  %v302_v23 = vld [vmem:[#allocation11] sm:$0xff]  ;;  %v377_v24 = vld [vmem:[%s654_s6] ss:$0 sm:$0xff] }
  0x36   :  { %250 = vmatpush.msra.mxu3 %v205_v30  ;;  %287 = vmatpush.msrb.mxu0 %v270_v47  ;;  %v378_v28 = vld [vmem:[%s656_s8] ss:$0 sm:$0xff] }
  0x37   :  { %231 = vmatpush.msra.mxu2 %v188_v31  ;;  %325 = vmatpush.msrb.mxu1 %v314_v5 }
  0x38   :  { %251 = vmatpush.msra.mxu3 %v204_v32  ;;  %288 = vmatpush.msrb.mxu0 %v269_v48 }
  0x39   :  { %232 = vmatpush.msra.mxu2 %v187_v33  ;;  %326 = vmatpush.msrb.mxu1 %v313_v6 }
  0x3a   :  { %252 = vmatpush.msra.mxu3 %v203_v35  ;;  %289 = vmatpush.msrb.mxu0 %v268_v49 }
  0x3b   :  { %233 = vmatpush.msra.mxu2 %v186_v34  ;;  %327 = vmatpush.msrb.mxu1 %v312_v7 }
  0x3c   :  { %253 = vmatpush.msra.mxu3 %v202_v37  ;;  %290 = vmatpush.msrb.mxu0 %v267_v50 }
  0x3d   :  { %234 = vmatpush.msra.mxu2 %v185_v36  ;;  %328 = vmatpush.msrb.mxu1 %v311_v8 }
  0x3e   :  { %254 = vmatpush.msra.mxu3 %v201_v39  ;;  %291 = vmatpush.msrb.mxu0 %v266_v51 }
  0x3f   :  { %235 = vmatpush.msra.mxu2 %v184_v38  ;;  %329 = vmatpush.msrb.mxu1 %v310_v9 }
  0x40   :  { %255 = vmatpush.msra.mxu3 %v200_v40  ;;  %292 = vmatpush.msrb.mxu0 %v265_v52 }
  0x41   :  { %330 = vmatpush.msrb.mxu1 %v309_v10 }
  0x42   :  { %293 = vmatpush.msrb.mxu0 %v264_v62 }
  0x43   :  { %331 = vmatpush.msrb.mxu1 %v308_v11 }
  0x44   :  { %294 = vmatpush.msrb.mxu0 %v263_v63 }
  0x45   :  { %332 = vmatpush.msrb.mxu1 %v307_v12 }
  0x46   :  { %295 = vmatpush.msrb.mxu0 %v262_v0 }
  0x47   :  { %333 = vmatpush.msrb.mxu1 %v306_v13 }
  0x48   :  { %296 = vmatpush.msrb.mxu0 %v261_v1 }
  0x49   :  { %334 = vmatpush.msrb.mxu1 %v305_v15 }
  0x4b   :  { %335 = vmatpush.msrb.mxu1 %v304_v21 }
  0x4d   :  { %336 = vmatpush.msrb.mxu1 %v303_v22 }
  0x4f   :  { %337 = vmatpush.msrb.mxu1 %v302_v23 }
  0xa1   :  { %v159_v56 = vpop.f32.mrf.mxu0 }
  0xa2   :  { %v179_v57 = vpop.f32.mrf.mxu1  ;;  %v160_v58 = vadd.f32 %v159_v56, %v134_v54 }
  0xa3   :  { %v180_v59 = vadd.f32 %v179_v57, %v135_v55 }
  0xa4   :  { %v182_v60 = vmax.f32 %v160_v58, 0.0 }
  0xa5   :  { %v183_v61 = vmax.f32 %v180_v59, 0.0 }
  0xa6   :  { %236 = vmatmul.f32.vlgmr.msra.gmra.mxu2 %v182_v60 }
  0xa7   :  { %256 = vmatmul.f32.vlgmr.msra.gmra.mxu3 %v183_v61 }
 0x129   :  { %v237_v16 = vpop.f32.mrf.mxu2 }
 0x12a   :  { %v257_v17 = vpop.f32.mrf.mxu3  ;;  %v238_v18 = vadd.f32 %v376_v14, %v237_v16 }
 0x12c   :  { %v258_v19 = vadd.f32 %v257_v17, %v238_v18 }
 0x12e   :  { %v260_v20 = vmax.f32 %v258_v19, 0.0 }
 0x130   :  { %297 = vmatmul.f32.vlgmr.msrb.gmra.mxu0 %v260_v20 }
 0x1ad   :  { %v298_v25 = vpop.f32.mrf.mxu0 }
 0x1ae   :  { %v299_v26 = vadd.f32 %v377_v24, %v298_v25 }
 0x1b0   :  { %v301_v27 = vmax.f32 %v299_v26, 0.0 }
 0x1b2   :  { %338 = vmatmul.f32.vlgmr.msrb.gmra.mxu1 %v301_v27 }
 0x22f   :  { %v339_v29 = vpop.f32.mrf.mxu1 }
 0x230   :  { %v340_v30 = vadd.f32 %v378_v28, %v339_v29 }
 0x232   :  { %342 = vst [vmem:[#allocation13] sm:$0xff] %v340_v30 }
 0x233   :  { %353 = dma.vmem_to_hbm [thread:$0]  %s349_s22, 128, %s351_s24, [#allocation4]  }
 0x234   :  { %555 = dma.done.wait [#allocation4], 128  }
 0x235   :  { %556 = vsyncadd [#allocation4], 4294967168 }
 0x236   :  { %358 = vsyncpa [#allocation3], 1 }
 0x237   :  { %359 = vsyncpa [#allocation6], 1 }
 0x238   :  { %360 = vsyncpa [#allocation9], 1 }
 0x239   :  { %361 = vsyncpa [#allocation12], 1 }
 0x23a   :  { %362 = vsyncpa [#allocation4], 1 }

// kernel: tpu_custom_call.1
= control target key start
LH: loop header
LB: loop body
LE: loop exit
PB: predicated region body
PF: predicated region fallthrough
CT: control target
= control target key end

     0   :  { %14 = vsyncpa [#allocation3], 0  ;;  %s648_s0 = inlined_call_operand.hbm [shape: f32[8,32], index: 0, kind: input, shape index: {}]   ;;  %s649_s1 = inlined_call_operand.hbm [shape: f32[32,256], index: 1, kind: input, shape index: {}]   ;;  %s650_s2 = inlined_call_operand.hbm [shape: f32[1,256], index: 2, kind: input, shape index: {}]   ;;  %s651_s3 = inlined_call_operand.hbm [shape: f32[256,128], index: 3, kind: input, shape index: {}]   ;;  %s652_s4 = inlined_call_operand.vmem [shape: f32[1,128], index: 4, kind: input, shape index: {}]   ;;  %s653_s5 = inlined_call_operand.hbm [shape: f32[128,128], index: 5, kind: input, shape index: {}]   ;;  %s654_s6 = inlined_call_operand.vmem [shape: f32[1,128], index: 6, kind: input, shape index: {}]   ;;  %s655_s7 = inlined_call_operand.hbm [shape: f32[128,128], index: 7, kind: input, shape index: {}]   ;;  %s656_s8 = inlined_call_operand.vmem [shape: f32[1,128], index: 8, kind: input, shape index: {}]   ;;  %s657_s9 = inlined_call_operand.hbm [shape: f32[8,128], index: 9, kind: output, shape index: {}]  }
   0x1   :  { %15 = vsyncpa [#allocation6], 0 }
   0x2   :  { %16 = vsyncpa [#allocation9], 0 }
   0x3   :  { %17 = vsyncpa [#allocation12], 0  ;;  %s34_s11 = sshll.u32 %s649_s1, 4  ;;  %s35_s11 = int_to_ptr.hbm [resolvable:$true] %s34_s11 }
   0x4   :  { %18 = vsyncpa [#allocation4], 0  ;;  %s557_s12 = smov [#allocation5]   ;;  %s58_s16 = sshll.u32 %s651_s3, 4  ;;  %s59_s16 = int_to_ptr.hbm [resolvable:$true] %s58_s16 }
   0x5   :  { %s36_s13 = sshll.u32 %s557_s12, 4  ;;  %s558_s17 = smov 256   ;;  %s37_s13 = int_to_ptr.vmem [resolvable:$true] %s36_s13 }
   0x6   :  { %s559_s18 = smov 16   ;;  %s560_s19 = smov [#allocation8]  }
   0x7   :  { %42 = dma.hbm_to_vmem [thread:$0]  %s35_s11, 1024, %s37_s13, [#allocation6], %s558_s17, %s558_s17, %s559_s18  }
   0x8   :  { %s60_s20 = sshll.u32 %s560_s19, 4  ;;  %s561_s21 = smov 128   ;;  %s61_s20 = int_to_ptr.vmem [resolvable:$true] %s60_s20 }
   0x9   :  { %s562_s22 = smov 8   ;;  %s24_s24 = sshll.u32 %s648_s0, 4  ;;  %s25_s24 = int_to_ptr.hbm [resolvable:$true] %s24_s24 }
   0xa   :  { %66 = dma.hbm_to_vmem [thread:$0]  %s59_s16, 4096, %s61_s20, [#allocation9], %s561_s21, %s561_s21, %s562_s22  }
   0xb   :  { %s563_s25 = smov [#allocation2]   ;;  %s48_s28 = sshll.u32 %s650_s2, 4  ;;  %s49_s28 = int_to_ptr.hbm [resolvable:$true] %s48_s28 }
   0xc   :  { %s26_s26 = sshll.u32 %s563_s25, 4  ;;  %s564_s29 = smov [#allocation7]   ;;  %s27_s26 = int_to_ptr.vmem [resolvable:$true] %s26_s26 }
   0xd   :  { %29 = dma.hbm_to_vmem [thread:$0]  %s25_s24, 128, %s27_s26, [#allocation3]  }
   0xe   :  { %s50_s30 = sshll.u32 %s564_s29, 4  ;;  %s73_s12 = sshll.u32 %s653_s5, 4  ;;  %s51_s30 = int_to_ptr.vmem [resolvable:$true] %s50_s30  ;;  %s74_s12 = int_to_ptr.hbm [resolvable:$true] %s73_s12 }
   0xf   :  { %53 = dma.hbm_to_vmem [thread:$0]  %s49_s28, 32, %s51_s30, [#allocation6]  }
  0x10   :  { %s88_s14 = sshll.u32 %s655_s7, 4  ;;  %s565_s15 = smov [#allocation10]   ;;  %s89_s14 = int_to_ptr.hbm [resolvable:$true] %s88_s14 }
  0x11   :  { %s75_s16 = sshll.u32 %s565_s15, 4  ;;  %s566_s2 = smov [#allocation11]   ;;  %s76_s16 = int_to_ptr.vmem [resolvable:$true] %s75_s16 }
  0x12   :  { %81 = dma.hbm_to_vmem [thread:$0]  %s74_s12, 2048, %s76_s16, [#allocation9], %s561_s21, %s561_s21, %s562_s22  }
  0x13   :  { %s90_s17 = sshll.u32 %s566_s2, 4  ;;  %s91_s17 = int_to_ptr.vmem [resolvable:$true] %s90_s17 }
  0x14   :  { %96 = dma.hbm_to_vmem [thread:$0]  %s89_s14, 2048, %s91_s17, [#allocation12], %s561_s21, %s561_s21, %s562_s22  }
  0x15   :  { %547 = dma.done.wait [#allocation3], 128  }
  0x16   :  { %548 = vsyncadd [#allocation3], 4294967168 }
  0x17   :  { %549 = dma.done.wait [#allocation6], 1056  }
  0x18   :  { %550 = vsyncadd [#allocation6], 4294966240 }
  0x19   :  { %551 = dma.done.wait [#allocation9], 6144  }
  0x1a   :  { %552 = vsyncadd [#allocation9], 4294961152 }
  0x1b   :  { %553 = dma.done.wait [#allocation12], 2048  }
  0x1c   :  { %554 = vsyncadd [#allocation12], 4294965248  ;;  %v130_v0 = vld [vmem:[#allocation5 + $0x30] sm:$0xff]  ;;  %v128_v1 = vld [vmem:[#allocation5 + $0x20] sm:$0xff]  ;;  %vm138_vm0 = vcmask 261120   ;;  %s567_s21 = smov [#allocation13]  }
  0x1d   :  { %v131_v2 = vld [vmem:[#allocation5 + $0x38] sm:$0xff]  ;;  %154 = vmatpush.msra.mxu0 %v130_v0  ;;  %v129_v3 = vld [vmem:[#allocation5 + $0x28] sm:$0xff]  ;;  %v126_v4 = vld [vmem:[#allocation5 + $0x10] sm:$0xff]  ;;  %s348_s22 = sshll.u32 %s567_s21, 4  ;;  %s350_s24 = sshll.u32 %s657_s9, 4  ;;  %s349_s22 = int_to_ptr.vmem [resolvable:$true] %s348_s22  ;;  %s351_s24 = int_to_ptr.hbm [resolvable:$true] %s350_s24 }
  0x1e   :  { %174 = vmatpush.msra.mxu1 %v131_v2  ;;  %v127_v5 = vld [vmem:[#allocation5 + $0x18] sm:$0xff]  ;;  %v124_v9 = vld [vmem:[#allocation5] sm:$0xff]  ;;  %v125_v10 = vld [vmem:[#allocation5 + $0x8] sm:$0xff] }
  0x1f   :  { %155 = vmatpush.msra.mxu0 %v128_v1  ;;  %v199_v6 = vld [vmem:[#allocation8 + $0x78] sm:$0xff]  ;;  %v198_v7 = vld [vmem:[#allocation8 + $0x70] sm:$0xff]  ;;  %v197_v13 = vld [vmem:[#allocation8 + $0x68] sm:$0xff] }
  0x20   :  { %175 = vmatpush.msra.mxu1 %v129_v3  ;;  %v215_v8 = vld [vmem:[#allocation8 + $0xf8] sm:$0xff]  ;;  %220 = vmatpush.msra.mxu2 %v199_v6  ;;  %v214_v11 = vld [vmem:[#allocation8 + $0xf0] sm:$0xff]  ;;  %v213_v14 = vld [vmem:[#allocation8 + $0xe8] sm:$0xff] }
  0x21   :  { %240 = vmatpush.msra.mxu3 %v215_v8  ;;  %156 = vmatpush.msra.mxu0 %v126_v4  ;;  %v123_v12 = vld [vmem:[#allocation2] sm:$0xff]  ;;  %v196_v15 = vld [vmem:[#allocation8 + $0x60] sm:$0xff]  ;;  %v193_v21 = vld [vmem:[#allocation8 + $0x48] sm:$0xff] }
  0x22   :  { %176 = vmatpush.msra.mxu1 %v127_v5  ;;  %221 = vmatpush.msra.mxu2 %v198_v7  ;;  %v212_v16 = vld [vmem:[#allocation8 + $0xe0] sm:$0xff]  ;;  %v195_v17 = vld [vmem:[#allocation8 + $0x58] sm:$0xff]  ;;  %v194_v19 = vld [vmem:[#allocation8 + $0x50] sm:$0xff] }
  0x23   :  { %241 = vmatpush.msra.mxu3 %v214_v11  ;;  %157 = vmatpush.msra.mxu0 %v124_v9  ;;  %v211_v18 = vld [vmem:[#allocation8 + $0xd8] sm:$0xff]  ;;  %v210_v20 = vld [vmem:[#allocation8 + $0xd0] sm:$0xff]  ;;  %v209_v22 = vld [vmem:[#allocation8 + $0xc8] sm:$0xff] }
  0x24   :  { %177 = vmatpush.msra.mxu1 %v125_v10  ;;  %363 = vmatmul.msk.f32.vlgmr.msra.gmra.mxu0 %vm138_vm0, %v123_v12  ;;  %v192_v23 = vld [vmem:[#allocation8 + $0x40] sm:$0xff]  ;;  %v191_v25 = vld [vmem:[#allocation8 + $0x38] sm:$0xff]  ;;  %v190_v27 = vld [vmem:[#allocation8 + $0x30] sm:$0xff] }
  0x25   :  { %364 = vmatmul.msk.f32.vlgmr.msra.gmra.mxu1 %vm138_vm0, %v123_v12  ;;  %222 = vmatpush.msra.mxu2 %v197_v13  ;;  %v208_v24 = vld [vmem:[#allocation8 + $0xc0] sm:$0xff]  ;;  %v207_v26 = vld [vmem:[#allocation8 + $0xb8] sm:$0xff]  ;;  %v206_v28 = vld [vmem:[#allocation8 + $0xb0] sm:$0xff] }
  0x26   :  { %242 = vmatpush.msra.mxu3 %v213_v14  ;;  %v189_v29 = vld [vmem:[#allocation8 + $0x28] sm:$0xff]  ;;  %v188_v31 = vld [vmem:[#allocation8 + $0x20] sm:$0xff]  ;;  %v187_v33 = vld [vmem:[#allocation8 + $0x18] sm:$0xff] }
  0x27   :  { %223 = vmatpush.msra.mxu2 %v196_v15  ;;  %v205_v30 = vld [vmem:[#allocation8 + $0xa8] sm:$0xff]  ;;  %v204_v32 = vld [vmem:[#allocation8 + $0xa0] sm:$0xff]  ;;  %v186_v34 = vld [vmem:[#allocation8 + $0x10] sm:$0xff] }
  0x28   :  { %243 = vmatpush.msra.mxu3 %v212_v16  ;;  %v203_v35 = vld [vmem:[#allocation8 + $0x98] sm:$0xff]  ;;  %v185_v36 = vld [vmem:[#allocation8 + $0x8] sm:$0xff]  ;;  %v202_v37 = vld [vmem:[#allocation8 + $0x90] sm:$0xff] }
  0x29   :  { %224 = vmatpush.msra.mxu2 %v195_v17  ;;  %v184_v38 = vld [vmem:[#allocation8] sm:$0xff]  ;;  %v201_v39 = vld [vmem:[#allocation8 + $0x88] sm:$0xff]  ;;  %v276_v41 = vld [vmem:[#allocation10 + $0x78] sm:$0xff] }
  0x2a   :  { %244 = vmatpush.msra.mxu3 %v211_v18  ;;  %v200_v40 = vld [vmem:[#allocation8 + $0x80] sm:$0xff]  ;;  %v275_v42 = vld [vmem:[#allocation10 + $0x70] sm:$0xff]  ;;  %281 = vmatpush.msrb.mxu0 %v276_v41  ;;  %v274_v43 = vld [vmem:[#allocation10 + $0x68] sm:$0xff] }
  0x2b   :  { %225 = vmatpush.msra.mxu2 %v194_v19  ;;  %v273_v44 = vld [vmem:[#allocation10 + $0x60] sm:$0xff]  ;;  %v272_v45 = vld [vmem:[#allocation10 + $0x58] sm:$0xff]  ;;  %v271_v46 = vld [vmem:[#allocation10 + $0x50] sm:$0xff] }
  0x2c   :  { %245 = vmatpush.msra.mxu3 %v210_v20  ;;  %282 = vmatpush.msrb.mxu0 %v275_v42  ;;  %v270_v47 = vld [vmem:[#allocation10 + $0x48] sm:$0xff]  ;;  %v269_v48 = vld [vmem:[#allocation10 + $0x40] sm:$0xff]  ;;  %v268_v49 = vld [vmem:[#allocation10 + $0x38] sm:$0xff] }
  0x2d   :  { %226 = vmatpush.msra.mxu2 %v193_v21  ;;  %v267_v50 = vld [vmem:[#allocation10 + $0x30] sm:$0xff]  ;;  %v266_v51 = vld [vmem:[#allocation10 + $0x28] sm:$0xff]  ;;  %v265_v52 = vld [vmem:[#allocation10 + $0x20] sm:$0xff] }
  0x2e   :  { %246 = vmatpush.msra.mxu3 %v209_v22  ;;  %283 = vmatpush.msrb.mxu0 %v274_v43  ;;  %v132_v53 = vld [vmem:[#allocation7] sm:$0x3]  ;;  %v263_v63 = vld [vmem:[#allocation10 + $0x10] sm:$0xff]  ;;  %v262_v0 = vld [vmem:[#allocation10 + $0x8] sm:$0xff] }
  0x2f   :  { %227 = vmatpush.msra.mxu2 %v192_v23  ;;  %v134_v54 = vperm.slane %v132_v53, 0  ;;  %v135_v55 = vperm.slane %v132_v53, 1  ;;  %v264_v62 = vld [vmem:[#allocation10 + $0x18] sm:$0xff]  ;;  %v261_v1 = vld [vmem:[#allocation10] sm:$0xff]  ;;  %v316_v3 = vld [vmem:[#allocation11 + $0x70] sm:$0xff] }
  0x30   :  { %247 = vmatpush.msra.mxu3 %v208_v24  ;;  %284 = vmatpush.msrb.mxu0 %v273_v44  ;;  %v317_v2 = vld [vmem:[#allocation11 + $0x78] sm:$0xff]  ;;  %v315_v4 = vld [vmem:[#allocation11 + $0x68] sm:$0xff]  ;;  %v314_v5 = vld [vmem:[#allocation11 + $0x60] sm:$0xff] }
  0x31   :  { %228 = vmatpush.msra.mxu2 %v191_v25  ;;  %322 = vmatpush.msrb.mxu1 %v317_v2  ;;  %v313_v6 = vld [vmem:[#allocation11 + $0x58] sm:$0xff]  ;;  %v312_v7 = vld [vmem:[#allocation11 + $0x50] sm:$0xff]  ;;  %v311_v8 = vld [vmem:[#allocation11 + $0x48] sm:$0xff] }
  0x32   :  { %248 = vmatpush.msra.mxu3 %v207_v26  ;;  %285 = vmatpush.msrb.mxu0 %v272_v45  ;;  %v310_v9 = vld [vmem:[#allocation11 + $0x40] sm:$0xff]  ;;  %v309_v10 = vld [vmem:[#allocation11 + $0x38] sm:$0xff]  ;;  %v308_v11 = vld [vmem:[#allocation11 + $0x30] sm:$0xff] }
  0x33   :  { %229 = vmatpush.msra.mxu2 %v190_v27  ;;  %323 = vmatpush.msrb.mxu1 %v316_v3  ;;  %v307_v12 = vld [vmem:[#allocation11 + $0x28] sm:$0xff]  ;;  %v306_v13 = vld [vmem:[#allocation11 + $0x20] sm:$0xff]  ;;  %v376_v14 = vld [vmem:[%s652_s4] ss:$0 sm:$0xff] }
  0x34   :  { %249 = vmatpush.msra.mxu3 %v206_v28  ;;  %286 = vmatpush.msrb.mxu0 %v271_v46  ;;  %v305_v15 = vld [vmem:[#allocation11 + $0x18] sm:$0xff]  ;;  %v304_v21 = vld [vmem:[#allocation11 + $0x10] sm:$0xff]  ;;  %v303_v22 = vld [vmem:[#allocation11 + $0x8] sm:$0xff] }
  0x35   :  { %230 = vmatpush.msra.mxu2 %v189_v29  ;;  %324 = vmatpush.msrb.mxu1 %v315_v4  ;;  %v302_v23 = vld [vmem:[#allocation11] sm:$0xff]  ;;  %v377_v24 = vld [vmem:[%s654_s6] ss:$0 sm:$0xff] }
  0x36   :  { %250 = vmatpush.msra.mxu3 %v205_v30  ;;  %287 = vmatpush.msrb.mxu0 %v270_v47  ;;  %v378_v28 = vld [vmem:[%s656_s8] ss:$0 sm:$0xff] }
  0x37   :  { %231 = vmatpush.msra.mxu2 %v188_v31  ;;  %325 = vmatpush.msrb.mxu1 %v314_v5 }
  0x38   :  { %251 = vmatpush.msra.mxu3 %v204_v32  ;;  %288 = vmatpush.msrb.mxu0 %v269_v48 }
  0x39   :  { %232 = vmatpush.msra.mxu2 %v187_v33  ;;  %326 = vmatpush.msrb.mxu1 %v313_v6 }
  0x3a   :  { %252 = vmatpush.msra.mxu3 %v203_v35  ;;  %289 = vmatpush.msrb.mxu0 %v268_v49 }
  0x3b   :  { %233 = vmatpush.msra.mxu2 %v186_v34  ;;  %327 = vmatpush.msrb.mxu1 %v312_v7 }
  0x3c   :  { %253 = vmatpush.msra.mxu3 %v202_v37  ;;  %290 = vmatpush.msrb.mxu0 %v267_v50 }
  0x3d   :  { %234 = vmatpush.msra.mxu2 %v185_v36  ;;  %328 = vmatpush.msrb.mxu1 %v311_v8 }
  0x3e   :  { %254 = vmatpush.msra.mxu3 %v201_v39  ;;  %291 = vmatpush.msrb.mxu0 %v266_v51 }
  0x3f   :  { %235 = vmatpush.msra.mxu2 %v184_v38  ;;  %329 = vmatpush.msrb.mxu1 %v310_v9 }
  0x40   :  { %255 = vmatpush.msra.mxu3 %v200_v40  ;;  %292 = vmatpush.msrb.mxu0 %v265_v52 }
  0x41   :  { %330 = vmatpush.msrb.mxu1 %v309_v10 }
  0x42   :  { %293 = vmatpush.msrb.mxu0 %v264_v62 }
  0x43   :  { %331 = vmatpush.msrb.mxu1 %v308_v11 }
  0x44   :  { %294 = vmatpush.msrb.mxu0 %v263_v63 }
  0x45   :  { %332 = vmatpush.msrb.mxu1 %v307_v12 }
  0x46   :  { %295 = vmatpush.msrb.mxu0 %v262_v0 }
  0x47   :  { %333 = vmatpush.msrb.mxu1 %v306_v13 }
  0x48   :  { %296 = vmatpush.msrb.mxu0 %v261_v1 }
  0x49   :  { %334 = vmatpush.msrb.mxu1 %v305_v15 }
  0x4b   :  { %335 = vmatpush.msrb.mxu1 %v304_v21 }
  0x4d   :  { %336 = vmatpush.msrb.mxu1 %v303_v22 }
  0x4f   :  { %337 = vmatpush.msrb.mxu1 %v302_v23 }
  0xa1   :  { %v159_v56 = vpop.f32.mrf.mxu0 }
  0xa2   :  { %v179_v57 = vpop.f32.mrf.mxu1  ;;  %v160_v58 = vadd.f32 %v159_v56, %v134_v54 }
  0xa3   :  { %v180_v59 = vadd.f32 %v179_v57, %v135_v55 }
  0xa4   :  { %v182_v60 = vmax.f32 %v160_v58, 0.0 }
  0xa5   :  { %v183_v61 = vmax.f32 %v180_v59, 0.0 }
  0xa6   :  { %236 = vmatmul.f32.vlgmr.msra.gmra.mxu2 %v182_v60 }
  0xa7   :  { %256 = vmatmul.f32.vlgmr.msra.gmra.mxu3 %v183_v61 }
 0x129   :  { %v237_v16 = vpop.f32.mrf.mxu2 }
 0x12a   :  { %v257_v17 = vpop.f32.mrf.mxu3  ;;  %v238_v18 = vadd.f32 %v376_v14, %v237_v16 }
 0x12c   :  { %v258_v19 = vadd.f32 %v257_v17, %v238_v18 }
 0x12e   :  { %v260_v20 = vmax.f32 %v258_v19, 0.0 }
 0x130   :  { %297 = vmatmul.f32.vlgmr.msrb.gmra.mxu0 %v260_v20 }
 0x1ad   :  { %v298_v25 = vpop.f32.mrf.mxu0 }
 0x1ae   :  { %v299_v26 = vadd.f32 %v377_v24, %v298_v25 }
 0x1b0   :  { %v301_v27 = vmax.f32 %v299_v26, 0.0 }
 0x1b2   :  { %338 = vmatmul.f32.vlgmr.msrb.gmra.mxu1 %v301_v27 }
 0x22f   :  { %v339_v29 = vpop.f32.mrf.mxu1 }
 0x230   :  { %v340_v30 = vadd.f32 %v378_v28, %v339_v29 }
 0x232   :  { %342 = vst [vmem:[#allocation13] sm:$0xff] %v340_v30 }
 0x233   :  { %353 = dma.vmem_to_hbm [thread:$0]  %s349_s22, 128, %s351_s24, [#allocation4]  }
 0x234   :  { %555 = dma.done.wait [#allocation4], 128  }
 0x235   :  { %556 = vsyncadd [#allocation4], 4294967168 }
 0x236   :  { %358 = vsyncpa [#allocation3], 1 }
 0x237   :  { %359 = vsyncpa [#allocation6], 1 }
 0x238   :  { %360 = vsyncpa [#allocation9], 1 }
 0x239   :  { %361 = vsyncpa [#allocation12], 1 }
 0x23a   :  { %362 = vsyncpa [#allocation4], 1 }

</bundles_post_ra>
